<compile_context>
chip_gen: v5e
topology: v5e:2x2
jax: 0.10.0
libtpu: 0.0.40
codegen_flags: <defaults>
</compile_context>

<pallas_src>
import math

import jax
import jax.numpy as jnp
from jax.experimental import pallas as pl
from jax.experimental.pallas import tpu as pltpu


def _round_up(v, m):
    return ((v + m - 1) // m) * m


def _cdiv(a, b):
    return -(-a // b)


def _pick_divisor_tile(dim, candidates):
    """Largest candidate that exactly divides `dim`, else None."""
    for c in candidates:
        if dim >= c and dim % c == 0:
            return c
    return None


def _vmem_capacity_bytes():
    try:
        cap = int(pltpu.get_tpu_info().vmem_capacity_bytes)
        if cap > 0:
            return cap
    except Exception:
        pass
    return 64 * 1024 * 1024  # conservative default (v7x per-TensorCore VMEM)


# ---------------------------------------------------------------------------
# Kernels
# ---------------------------------------------------------------------------
def _make_kernel(has_bias, use_scratch):
    if use_scratch:
        # Output dtype != f32: accumulate in an f32 VMEM scratch, cast at k==last.
        def kernel(*refs):
            if has_bias:
                x_ref, w_ref, b_ref, o_ref, acc_ref = refs
            else:
                x_ref, w_ref, o_ref, acc_ref = refs
                b_ref = None
            k = pl.program_id(2)

            @pl.when(k == 0)
            def _():
                if has_bias:
                    acc_ref[...] = jnp.broadcast_to(
                        b_ref[...].astype(jnp.float32), acc_ref.shape)
                else:
                    acc_ref[...] = jnp.zeros_like(acc_ref)

            acc_ref[...] += jnp.dot(x_ref[...], w_ref[...],
                                    preferred_element_type=jnp.float32)

            @pl.when(k == pl.num_programs(2) - 1)
            def _():
                o_ref[...] = acc_ref[...].astype(o_ref.dtype)

        return kernel

    # Output dtype == f32: accumulate directly into the resident output block.
    def kernel(*refs):
        if has_bias:
            x_ref, w_ref, b_ref, o_ref = refs
        else:
            x_ref, w_ref, o_ref = refs
            b_ref = None
        k = pl.program_id(2)

        @pl.when(k == 0)
        def _():
            if has_bias:
                o_ref[...] = jnp.broadcast_to(
                    b_ref[...].astype(o_ref.dtype), o_ref.shape)
            else:
                o_ref[...] = jnp.zeros_like(o_ref)

        o_ref[...] += jnp.dot(x_ref[...], w_ref[...],
                              preferred_element_type=jnp.float32)

    return kernel


# ---------------------------------------------------------------------------
# Parameter preparation (one-time; hoists pad/transpose out of the hot path)
# ---------------------------------------------------------------------------
def prepare_linear_params(weight, bias=None):
    """weight: (out_ch, in_ch) PyTorch layout -> (in_ch, n_pad) K-major layout."""
    out_ch, in_ch = weight.shape
    n_pad = _round_up(out_ch, 128)
    w_kn = jnp.transpose(weight)                       # (in_ch, out_ch)
    if n_pad != out_ch:
        w_kn = jnp.pad(w_kn, ((0, 0), (0, n_pad - out_ch)))
    b_pad = None
    if bias is not None:
        b = bias if n_pad == out_ch else jnp.pad(bias, ((0, n_pad - out_ch),))
        b_pad = b.reshape(1, n_pad)
    return w_kn, b_pad, out_ch


# ---------------------------------------------------------------------------
# Pallas call
# ---------------------------------------------------------------------------
def _footprint_bytes(tm, tn, tk, x_bytes, w_bytes, o_bytes, b_bytes,
                     has_bias, use_scratch, w_bufs=2):
    f = 2 * tm * tk * x_bytes       # x tiles (double-buffered)
    f += w_bufs * tk * tn * w_bytes  # weight tiles
    f += 2 * tm * tn * o_bytes       # output tiles
    if has_bias:
        f += 2 * tn * b_bytes
    if use_scratch:
        f += tm * tn * 4
    return f


def _linear_apply(x2, w_kn, b_pad, out_dtype, tm=None, tn=None, tk=None):
    m, in_ch = x2.shape
    k_dim, n_pad = w_kn.shape
    assert k_dim == in_ch

    has_bias = b_pad is not None
    use_scratch = jnp.dtype(out_dtype) != jnp.dtype(jnp.float32)

    x_bytes = jnp.dtype(x2.dtype).itemsize
    w_bytes = jnp.dtype(w_kn.dtype).itemsize
    o_bytes = jnp.dtype(out_dtype).itemsize
    b_bytes = jnp.dtype(b_pad.dtype).itemsize if has_bias else 0

    vmem_cap = _vmem_capacity_bytes()
    budget = min((vmem_cap * 5) // 8, 80 * 1024 * 1024)

    # --- tile selection ------------------------------------------------------
    if tk is None:
        tk = _pick_divisor_tile(in_ch, (1024, 512, 256, 128))
        if tk is None:
            tk = in_ch  # full-K fallback (non-128-aligned K); VMEM-guarded below
    if tn is None:
        tn = _pick_divisor_tile(n_pad, (1024, 768, 512, 384, 256))
        if tn is None:
            tn = n_pad if n_pad <= 1024 else 128
    if tm is None:
        # Never vastly exceed the real row count (no MXU work on garbage rows).
        tm = min(512, _round_up(max(m, 1), 256))

    # Keep >= 2 parallel (i, j) blocks when possible (both v7x TensorCores busy).
    if _cdiv(m, tm) * (n_pad // tn) < 2:
        if m > 128:
            tm = _round_up(_cdiv(m, 2), 128)
        elif n_pad >= 256 and (n_pad // 2) % 128 == 0:
            tn = n_pad // 2

    # --- VMEM guard (v7x has only 64 MiB per TensorCore) ----------------------
    def fp(w_bufs=2):
        return _footprint_bytes(tm, tn, tk, x_bytes, w_bytes, o_bytes,
                                b_bytes, has_bias, use_scratch, w_bufs)

    while fp() > budget:
        if tm > 256:
            tm //= 2
        elif tk > 128 and (tk // 2) % 128 == 0 and in_ch % (tk // 2) == 0:
            tk //= 2
        elif tn > 128 and (tn // 2) % 128 == 0 and n_pad % (tn // 2) == 0:
            tn //= 2
        elif tn > 128 and n_pad % 128 == 0:
            tn = 128
        else:
            # TODO(synk): a huge non-128-aligned K can still overflow the budget;
            # would need a zero-padded K copy to tile it.
            break

    grid_i = _cdiv(m, tm)
    grid_j = n_pad // tn
    grid_k = in_ch // tk
    grid = (grid_i, grid_j, grid_k)

    # Deeper weight buffering only when K streams in many narrow tiles (v5e case).
    w_bufs = 3 if (tk <= 128 and grid_k >= 3 and fp(3) <= budget) else 2

    vmem_limit = int(min(max(fp(w_bufs) * 5 // 4 + (4 << 20), 16 << 20),
                         max((vmem_cap * 3) // 4, 16 << 20)))

    # --- specs / cost ----------------------------------------------------------
    x_spec = pl.BlockSpec((tm, tk), lambda i, j, k: (i, k))
    if w_bufs == 3:
        w_spec = pl.BlockSpec((tk, tn), lambda i, j, k: (k, j),
                              pipeline_mode=pl.Buffered(3))
    else:
        w_spec = pl.BlockSpec((tk, tn), lambda i, j, k: (k, j))

    in_specs = [x_spec, w_spec]
    operands = [x2, w_kn]
    if has_bias:
        in_specs.append(pl.BlockSpec((1, tn), lambda i, j, k: (0, j)))
        operands.append(b_pad)

    scratch_shapes = [pltpu.VMEM((tm, tn), jnp.float32)] if use_scratch else []

    cost = pl.CostEstimate(
        flops=2 * m * in_ch * n_pad,
        transcendentals=0,
        bytes_accessed=int(grid_j * m * in_ch * x_bytes
                           + grid_i * in_ch * n_pad * w_bytes
                           + (n_pad * b_bytes if has_bias else 0)
                           + m * n_pad * o_bytes),
    )

    kernel = _make_kernel(has_bias, use_scratch)

    return pl.pallas_call(
        kernel,
        out_shape=jax.ShapeDtypeStruct((m, n_pad), out_dtype),
        grid_spec=pltpu.PrefetchScalarGridSpec(
            num_scalar_prefetch=0,
            grid=grid,
            in_specs=in_specs,
            out_specs=pl.BlockSpec((tm, tn), lambda i, j, k: (i, j)),
            scratch_shapes=scratch_shapes,
        ),
        compiler_params=pltpu.CompilerParams(
            dimension_semantics=("parallel", "parallel", "arbitrary"),
            vmem_limit_bytes=vmem_limit,
        ),
        cost_estimate=cost,
    )(*operands)


def linear_pallas_prepared(x, w_kn, b_pad, out_ch, *, tm=None, tn=None, tk=None):
    """x: [..., in_ch]; w_kn: (in_ch, n_pad) prepared weight; b_pad: (1, n_pad) or None."""
    in_ch, n_pad = w_kn.shape
    lead = x.shape[:-1]
    m = int(math.prod(lead)) if lead else 1
    x2 = x.reshape(m, in_ch)
    out = _linear_apply(x2, w_kn, b_pad, x.dtype, tm=tm, tn=tn, tk=tk)
    if n_pad != out_ch:
        out = out[:, :out_ch]
    return out.reshape(*lead, out_ch)


def linear_pallas(x, weight, bias=None, *, tm=None, tn=None, tk=None):
    """Convenience path: weight in PyTorch (out_ch, in_ch) layout, prep per call."""
    w_kn, b_pad, out_ch = prepare_linear_params(weight, bias)
    return linear_pallas_prepared(x, w_kn, b_pad, out_ch, tm=tm, tn=tn, tk=tk)


def init_linear_params(key, in_channels, out_channels):
    """Xavier-normal weight (out, in), zero bias (out,) — matches the PyTorch init."""
    std = math.sqrt(2.0 / (in_channels + out_channels))
    w = jax.random.normal(key, (out_channels, in_channels), dtype=jnp.float32) * std
    b = jnp.zeros((out_channels,), dtype=jnp.float32)
    return w, b


if __name__ == "__main__":
    in_channels = 32
    out_channels = 64
    batch, seq = 2, 8  # inputs: (batch, seq, in_channels)

    key = jax.random.PRNGKey(0)
    k_w, k_x = jax.random.split(key)

    weight, bias = init_linear_params(k_w, in_channels, out_channels)
    x = jax.random.normal(k_x, (batch, seq, in_channels), dtype=jnp.float32)

    # Prepare weights once (pad/transpose hoisted out of the hot path), then apply.
    w_kn, b_pad, oc = prepare_linear_params(weight, bias)
    y = jax.block_until_ready(linear_pallas_prepared(x, w_kn, b_pad, oc))

    y_ref = x @ weight.T + bias
    assert y.shape == (batch, seq, out_channels)
    assert jnp.allclose(y, y_ref, atol=1e-5, rtol=1e-5)

    # Also exercise the bias=False path and the convenience wrapper.
    y_nb = jax.block_until_ready(linear_pallas(x, weight, None))
    assert jnp.allclose(y_nb, x @ weight.T, atol=1e-5, rtol=1e-5)

    print("KERNEL_OK")
</pallas_src>

<mosaic_0001>
module attributes {stable_mosaic.version = 11 : i64} {
  func.func @kernel(%arg0: i32, %arg1: i32, %arg2: i32, %arg3: memref<256x32xf32, #tpu.memory_space<vmem>>, %arg4: memref<32x128xf32, #tpu.memory_space<vmem>>, %arg5: memref<1x128xf32, #tpu.memory_space<vmem>>, %arg6: memref<256x128xf32, #tpu.memory_space<vmem>>) attributes {dimension_semantics = [#tpu.dimension_semantics<parallel>, #tpu.dimension_semantics<parallel>, #tpu.dimension_semantics<arbitrary>], iteration_bounds = array<i64: 1, 1, 1>, scalar_prefetch = 0 : i64, scratch_operands = 0 : i64, tpu.core_type = #tpu.core_type<tc>, window_params = [{transform_indices = @transform_0, window_bounds = array<i64: 256, 32>}, {transform_indices = @transform_1, window_bounds = array<i64: 32, 128>}, {transform_indices = @transform_2, window_bounds = array<i64: 1, 128>}, {transform_indices = @transform_3, window_bounds = array<i64: 256, 128>}]} {
    %c0_i32 = arith.constant 0 : i32
    %0 = arith.cmpi eq, %arg2, %c0_i32 : i32
    %1 = arith.extui %0 : i1 to i32
    %c0_i32_0 = arith.constant 0 : i32
    %2 = arith.cmpi ne, %1, %c0_i32_0 : i32
    scf.if %2 {
      %c0_8 = arith.constant 0 : index
      %c0_9 = arith.constant 0 : index
      %9 = vector.load %arg5[%c0_8, %c0_9] : memref<1x128xf32, #tpu.memory_space<vmem>>, vector<1x128xf32>
      %10 = vector.shape_cast %9 : vector<1x128xf32> to vector<1x128xf32>
      %11 = vector.broadcast %10 : vector<1x128xf32> to vector<256x128xf32>
      %c0_10 = arith.constant 0 : index
      %c0_11 = arith.constant 0 : index
      %12 = vector.load %arg6[%c0_10, %c0_11] : memref<256x128xf32, #tpu.memory_space<vmem>>, vector<256x128xf32>
      tpu.vector_store %arg6[%c0_10, %c0_11], %11 {strides = array<i32>} : memref<256x128xf32, #tpu.memory_space<vmem>>, vector<256x128xf32>,
    } else {
    }
    %c0 = arith.constant 0 : index
    %c0_1 = arith.constant 0 : index
    %3 = vector.load %arg6[%c0, %c0_1] : memref<256x128xf32, #tpu.memory_space<vmem>>, vector<256x128xf32>
    %c0_2 = arith.constant 0 : index
    %c0_3 = arith.constant 0 : index
    %4 = vector.load %arg3[%c0_2, %c0_3] : memref<256x32xf32, #tpu.memory_space<vmem>>, vector<256x32xf32>
    %c0_4 = arith.constant 0 : index
    %c0_5 = arith.constant 0 : index
    %5 = vector.load %arg4[%c0_4, %c0_5] : memref<32x128xf32, #tpu.memory_space<vmem>>, vector<32x128xf32>
    %cst = arith.constant dense<0.000000e+00> : vector<256x128xf32>
    %6 = tpu.matmul %4, %5, %cst {dimension_numbers = #tpu.dot_dimension_numbers<[1], [0], [0], [1], [0, 0, 1, 1], [], []>} : vector<256x32xf32>, vector<32x128xf32>, vector<256x128xf32> -> vector<256x128xf32>
    %7 = arith.addf %3, %6 : vector<256x128xf32>
    %c0_6 = arith.constant 0 : index
    %c0_7 = arith.constant 0 : index
    %8 = vector.load %arg6[%c0_6, %c0_7] : memref<256x128xf32, #tpu.memory_space<vmem>>, vector<256x128xf32>
    tpu.vector_store %arg6[%c0_6, %c0_7], %7 {strides = array<i32>} : memref<256x128xf32, #tpu.memory_space<vmem>>, vector<256x128xf32>,
    return
  }
  func.func @transform_0(%arg0: i32, %arg1: i32, %arg2: i32) -> (i32, i32) {
    %c0_i32 = arith.constant 0 : i32
    return %arg0, %arg2 : i32, i32
  }
  func.func @transform_1(%arg0: i32, %arg1: i32, %arg2: i32) -> (i32, i32) {
    %c0_i32 = arith.constant 0 : i32
    return %arg2, %arg1 : i32, i32
  }
  func.func @transform_2(%arg0: i32, %arg1: i32, %arg2: i32) -> (i32, i32) {
    %c0_i32 = arith.constant 0 : i32
    %c0_i32_0 = arith.constant 0 : i32
    return %c0_i32, %arg1 : i32, i32
  }
  func.func @transform_3(%arg0: i32, %arg1: i32, %arg2: i32) -> (i32, i32) {
    %c0_i32 = arith.constant 0 : i32
    return %arg0, %arg1 : i32, i32
  }
}

</mosaic_0001>

<bundles_post_ra>
// kernel: tpu_custom_call.1
= control target key start
LH: loop header
LB: loop body
LE: loop exit
PB: predicated region body
PF: predicated region fallthrough
CT: control target
= control target key end

     0   :  { %8 = vsyncpa [#allocation3], 0  ;;  %s689_s0 = inlined_call_operand.hbm [shape: f32[16,32], index: 0, kind: input, shape index: {}]   ;;  %s690_s1 = inlined_call_operand.hbm [shape: f32[32,128], index: 1, kind: input, shape index: {}]   ;;  %s691_s2 = inlined_call_operand.vmem [shape: f32[1,128], index: 2, kind: input, shape index: {}]   ;;  %s692_s3 = inlined_call_operand.hbm [shape: f32[16,128], index: 3, kind: output, shape index: {}]  }
   0x1   :  { %9 = vsyncpa [#allocation6], 0 }
   0x2   :  { %10 = vsyncpa [#allocation4], 0 }
   0x3   :  { %14 = vsyncadd [#allocation3], 3840  ;;  %s15_s14 = sshll.u32 %s689_s0, 4  ;;  %s577_s15 = smov [#allocation2]   ;;  %s16_s14 = int_to_ptr.hbm [resolvable:$true] %s15_s14 }
   0x4   :  { %s17_s16 = sshll.u32 %s577_s15, 4  ;;  %s28_s19 = sshll.u32 %s690_s1, 4  ;;  %s18_s16 = int_to_ptr.vmem [resolvable:$true] %s17_s16  ;;  %s29_s19 = int_to_ptr.hbm [resolvable:$true] %s28_s19 }
   0x5   :  { %s578_s20 = smov 128   ;;  %s579_s21 = smov 8  }
   0x6   :  { %23 = dma.hbm_to_vmem [thread:$0]  %s16_s14, 256, %s18_s16, [#allocation3], %s578_s20, %s578_s20, %s579_s21  }
   0x7   :  { %s580_s22 = smov [#allocation5]  }
   0x8   :  { %s30_s23 = sshll.u32 %s580_s22, 4  ;;  %s31_s23 = int_to_ptr.vmem [resolvable:$true] %s30_s23 }
   0x9   :  { %36 = dma.hbm_to_vmem [thread:$0]  %s29_s19, 512, %s31_s23, [#allocation6], %s578_s20, %s578_s20, %s579_s21  }
   0xa   :  { %571 = dma.done.wait [#allocation3], 4096  }
   0xb   :  { %572 = vsyncadd [#allocation3], 4294963200 }
   0xc   :  { %573 = dma.done.wait [#allocation6], 512  }
   0xd   :  { %574 = vsyncadd [#allocation6], 4294966784  ;;  %v154_v0 = vld [vmem:[#allocation5 + $0x18] sm:$0xff]  ;;  %v153_v1 = vld [vmem:[#allocation5 + $0x10] sm:$0xff]  ;;  %vm155_vm0 = vcmask 261120  }
   0xe   :  { %482 = vmatpush.msra.mxu2 %v154_v0  ;;  %483 = vmatpush.msra.mxu3 %v154_v0  ;;  %v152_v2 = vld [vmem:[#allocation5 + $0x8] sm:$0xff]  ;;  %v151_v3 = vld [vmem:[#allocation5] sm:$0xff]  ;;  %v137_v12 = vld [vmem:[#allocation2 + $0x90] sm:$0xff] }
   0xf   :  { %264 = vmatpush.msra.mxu0 %v154_v0  ;;  %481 = vmatpush.msra.mxu1 %v154_v0  ;;  %v135_v4 = vld [vmem:[#allocation2 + $0x80] sm:$0xff]  ;;  %v136_v8 = vld [vmem:[#allocation2 + $0x88] sm:$0xff]  ;;  %v145_v13 = vld [vmem:[#allocation2 + $0xd0] sm:$0xff] }
  0x10   :  { %485 = vmatpush.msra.mxu2 %v153_v1  ;;  %486 = vmatpush.msra.mxu3 %v153_v1  ;;  %v143_v5 = vld [vmem:[#allocation2 + $0xc0] sm:$0xff]  ;;  %v144_v9 = vld [vmem:[#allocation2 + $0xc8] sm:$0xff]  ;;  %v121_v14 = vld [vmem:[#allocation2 + $0x10] sm:$0xff] }
  0x11   :  { %265 = vmatpush.msra.mxu0 %v153_v1  ;;  %484 = vmatpush.msra.mxu1 %v153_v1  ;;  %v119_v6 = vld [vmem:[#allocation2] sm:$0xff]  ;;  %v120_v10 = vld [vmem:[#allocation2 + $0x8] sm:$0xff]  ;;  %v129_v15 = vld [vmem:[#allocation2 + $0x50] sm:$0xff] }
  0x12   :  { %488 = vmatpush.msra.mxu2 %v152_v2  ;;  %489 = vmatpush.msra.mxu3 %v152_v2  ;;  %v127_v7 = vld [vmem:[#allocation2 + $0x40] sm:$0xff]  ;;  %v128_v11 = vld [vmem:[#allocation2 + $0x48] sm:$0xff]  ;;  %v138_v16 = vld [vmem:[#allocation2 + $0x98] sm:$0xff] }
  0x13   :  { %266 = vmatpush.msra.mxu0 %v152_v2  ;;  %487 = vmatpush.msra.mxu1 %v152_v2  ;;  %v146_v17 = vld [vmem:[#allocation2 + $0xd8] sm:$0xff]  ;;  %v139_v20 = vld [vmem:[#allocation2 + $0xa0] sm:$0xff]  ;;  %v140_v24 = vld [vmem:[#allocation2 + $0xa8] sm:$0xff] }
  0x14   :  { %491 = vmatpush.msra.mxu2 %v151_v3  ;;  %492 = vmatpush.msra.mxu3 %v151_v3  ;;  %v122_v18 = vld [vmem:[#allocation2 + $0x18] sm:$0xff]  ;;  %v147_v21 = vld [vmem:[#allocation2 + $0xe0] sm:$0xff]  ;;  %v148_v25 = vld [vmem:[#allocation2 + $0xe8] sm:$0xff] }
  0x15   :  { %465 = vmatmul.msk.f32.vlgmr.msra.gmra.mxu2 %vm155_vm0, %v135_v4  ;;  %473 = vmatmul.msk.f32.vlgmr.msra.gmra.mxu3 %vm155_vm0, %v143_v5  ;;  %v130_v19 = vld [vmem:[#allocation2 + $0x58] sm:$0xff]  ;;  %v123_v22 = vld [vmem:[#allocation2 + $0x20] sm:$0xff]  ;;  %v124_v26 = vld [vmem:[#allocation2 + $0x28] sm:$0xff] }
  0x16   :  { %267 = vmatpush.msra.mxu0 %v151_v3  ;;  %490 = vmatpush.msra.mxu1 %v151_v3  ;;  %v131_v23 = vld [vmem:[#allocation2 + $0x60] sm:$0xff]  ;;  %v132_v27 = vld [vmem:[#allocation2 + $0x68] sm:$0xff]  ;;  %v141_v28 = vld [vmem:[#allocation2 + $0xb0] sm:$0xff] }
  0x17   :  { %449 = vmatmul.msk.f32.vlgmr.msra.gmra.mxu0 %vm155_vm0, %v119_v6  ;;  %457 = vmatmul.msk.f32.vlgmr.msra.gmra.mxu1 %vm155_vm0, %v127_v7  ;;  %v149_v29 = vld [vmem:[#allocation2 + $0xf0] sm:$0xff]  ;;  %v142_v32 = vld [vmem:[#allocation2 + $0xb8] sm:$0xff]  ;;  %v649_v36 = vld [vmem:[%s691_s2] ss:$0 sm:$0xff] }
  0x18   :  { %v125_v30 = vld [vmem:[#allocation2 + $0x30] sm:$0xff]  ;;  %v150_v33 = vld [vmem:[#allocation2 + $0xf8] sm:$0xff] }
  0x19   :  { %v133_v31 = vld [vmem:[#allocation2 + $0x70] sm:$0xff]  ;;  %v126_v34 = vld [vmem:[#allocation2 + $0x38] sm:$0xff] }
  0x1a   :  { %v134_v35 = vld [vmem:[#allocation2 + $0x78] sm:$0xff] }
  0x1d   :  { %466 = vmatmul.msk.f32.gmra.mxu2 %vm155_vm0, %v136_v8  ;;  %474 = vmatmul.msk.f32.gmra.mxu3 %vm155_vm0, %v144_v9 }
  0x1f   :  { %450 = vmatmul.msk.f32.gmra.mxu0 %vm155_vm0, %v120_v10  ;;  %458 = vmatmul.msk.f32.gmra.mxu1 %vm155_vm0, %v128_v11 }
  0x25   :  { %467 = vmatmul.msk.f32.gmra.mxu2 %vm155_vm0, %v137_v12  ;;  %475 = vmatmul.msk.f32.gmra.mxu3 %vm155_vm0, %v145_v13 }
  0x27   :  { %451 = vmatmul.msk.f32.gmra.mxu0 %vm155_vm0, %v121_v14  ;;  %459 = vmatmul.msk.f32.gmra.mxu1 %vm155_vm0, %v129_v15 }
  0x2d   :  { %468 = vmatmul.msk.f32.gmra.mxu2 %vm155_vm0, %v138_v16  ;;  %476 = vmatmul.msk.f32.gmra.mxu3 %vm155_vm0, %v146_v17 }
  0x2f   :  { %452 = vmatmul.msk.f32.gmra.mxu0 %vm155_vm0, %v122_v18  ;;  %460 = vmatmul.msk.f32.gmra.mxu1 %vm155_vm0, %v130_v19 }
  0x35   :  { %469 = vmatmul.msk.f32.gmra.mxu2 %vm155_vm0, %v139_v20  ;;  %477 = vmatmul.msk.f32.gmra.mxu3 %vm155_vm0, %v147_v21 }
  0x37   :  { %453 = vmatmul.msk.f32.gmra.mxu0 %vm155_vm0, %v123_v22  ;;  %461 = vmatmul.msk.f32.gmra.mxu1 %vm155_vm0, %v131_v23 }
  0x3d   :  { %470 = vmatmul.msk.f32.gmra.mxu2 %vm155_vm0, %v140_v24  ;;  %478 = vmatmul.msk.f32.gmra.mxu3 %vm155_vm0, %v148_v25 }
  0x3f   :  { %454 = vmatmul.msk.f32.gmra.mxu0 %vm155_vm0, %v124_v26  ;;  %462 = vmatmul.msk.f32.gmra.mxu1 %vm155_vm0, %v132_v27 }
  0x45   :  { %471 = vmatmul.msk.f32.gmra.mxu2 %vm155_vm0, %v141_v28  ;;  %479 = vmatmul.msk.f32.gmra.mxu3 %vm155_vm0, %v149_v29 }
  0x47   :  { %455 = vmatmul.msk.f32.gmra.mxu0 %vm155_vm0, %v125_v30  ;;  %463 = vmatmul.msk.f32.gmra.mxu1 %vm155_vm0, %v133_v31 }
  0x4d   :  { %472 = vmatmul.msk.f32.gmra.mxu2 %vm155_vm0, %v142_v32  ;;  %480 = vmatmul.msk.f32.gmra.mxu3 %vm155_vm0, %v150_v33 }
  0x4f   :  { %456 = vmatmul.msk.f32.gmra.mxu0 %vm155_vm0, %v126_v34  ;;  %464 = vmatmul.msk.f32.gmra.mxu1 %vm155_vm0, %v134_v35 }
  0x94   :  { %v269_v37 = vpop.f32.mrf.mxu0  ;;  %v293_v38 = vpop.f32.mrf.mxu1 }
  0x95   :  { %v365_v39 = vadd.f32 %v649_v36, %v269_v37  ;;  %v373_v40 = vadd.f32 %v649_v36, %v293_v38 }
  0x97   :  { %397 = vst [vmem:[#allocation7] sm:$0xff] %v365_v39 }
  0x98   :  { %405 = vst [vmem:[#allocation7 + $0x40] sm:$0xff] %v373_v40  ;;  %v317_v41 = vpop.f32.mrf.mxu2  ;;  %v341_v42 = vpop.f32.mrf.mxu3 }
  0x99   :  { %v381_v43 = vadd.f32 %v649_v36, %v317_v41  ;;  %v389_v44 = vadd.f32 %v649_v36, %v341_v42 }
  0x9b   :  { %413 = vst [vmem:[#allocation7 + $0x80] sm:$0xff] %v381_v43 }
  0x9c   :  { %421 = vst [vmem:[#allocation7 + $0xc0] sm:$0xff] %v389_v44  ;;  %v272_v45 = vpop.f32.mrf.mxu0  ;;  %v296_v46 = vpop.f32.mrf.mxu1 }
  0x9d   :  { %v366_v47 = vadd.f32 %v649_v36, %v272_v45  ;;  %v374_v48 = vadd.f32 %v649_v36, %v296_v46 }
  0x9f   :  { %398 = vst [vmem:[#allocation7 + $0x8] sm:$0xff] %v366_v47 }
  0xa0   :  { %406 = vst [vmem:[#allocation7 + $0x48] sm:$0xff] %v374_v48  ;;  %v320_v49 = vpop.f32.mrf.mxu2  ;;  %v344_v50 = vpop.f32.mrf.mxu3 }
  0xa1   :  { %v382_v51 = vadd.f32 %v649_v36, %v320_v49  ;;  %v390_v52 = vadd.f32 %v649_v36, %v344_v50 }
  0xa3   :  { %414 = vst [vmem:[#allocation7 + $0x88] sm:$0xff] %v382_v51 }
  0xa4   :  { %422 = vst [vmem:[#allocation7 + $0xc8] sm:$0xff] %v390_v52  ;;  %v275_v53 = vpop.f32.mrf.mxu0  ;;  %v299_v54 = vpop.f32.mrf.mxu1 }
  0xa5   :  { %v367_v55 = vadd.f32 %v649_v36, %v275_v53  ;;  %v375_v56 = vadd.f32 %v649_v36, %v299_v54 }
  0xa7   :  { %399 = vst [vmem:[#allocation7 + $0x10] sm:$0xff] %v367_v55 }
  0xa8   :  { %407 = vst [vmem:[#allocation7 + $0x50] sm:$0xff] %v375_v56  ;;  %v323_v57 = vpop.f32.mrf.mxu2  ;;  %v347_v58 = vpop.f32.mrf.mxu3 }
  0xa9   :  { %v383_v59 = vadd.f32 %v649_v36, %v323_v57  ;;  %v391_v60 = vadd.f32 %v649_v36, %v347_v58 }
  0xab   :  { %415 = vst [vmem:[#allocation7 + $0x90] sm:$0xff] %v383_v59 }
  0xac   :  { %423 = vst [vmem:[#allocation7 + $0xd0] sm:$0xff] %v391_v60  ;;  %v278_v61 = vpop.f32.mrf.mxu0  ;;  %v302_v62 = vpop.f32.mrf.mxu1 }
  0xad   :  { %v368_v63 = vadd.f32 %v649_v36, %v278_v61  ;;  %v376_v0 = vadd.f32 %v649_v36, %v302_v62 }
  0xaf   :  { %400 = vst [vmem:[#allocation7 + $0x18] sm:$0xff] %v368_v63 }
  0xb0   :  { %408 = vst [vmem:[#allocation7 + $0x58] sm:$0xff] %v376_v0  ;;  %v326_v1 = vpop.f32.mrf.mxu2  ;;  %v350_v2 = vpop.f32.mrf.mxu3 }
  0xb1   :  { %v384_v3 = vadd.f32 %v649_v36, %v326_v1  ;;  %v392_v4 = vadd.f32 %v649_v36, %v350_v2 }
  0xb3   :  { %416 = vst [vmem:[#allocation7 + $0x98] sm:$0xff] %v384_v3 }
  0xb4   :  { %424 = vst [vmem:[#allocation7 + $0xd8] sm:$0xff] %v392_v4  ;;  %v281_v5 = vpop.f32.mrf.mxu0  ;;  %v305_v6 = vpop.f32.mrf.mxu1 }
  0xb5   :  { %v369_v7 = vadd.f32 %v649_v36, %v281_v5  ;;  %v377_v8 = vadd.f32 %v649_v36, %v305_v6 }
  0xb7   :  { %401 = vst [vmem:[#allocation7 + $0x20] sm:$0xff] %v369_v7 }
  0xb8   :  { %409 = vst [vmem:[#allocation7 + $0x60] sm:$0xff] %v377_v8  ;;  %v329_v9 = vpop.f32.mrf.mxu2  ;;  %v353_v10 = vpop.f32.mrf.mxu3 }
  0xb9   :  { %v385_v11 = vadd.f32 %v649_v36, %v329_v9  ;;  %v393_v12 = vadd.f32 %v649_v36, %v353_v10 }
  0xbb   :  { %417 = vst [vmem:[#allocation7 + $0xa0] sm:$0xff] %v385_v11 }
  0xbc   :  { %425 = vst [vmem:[#allocation7 + $0xe0] sm:$0xff] %v393_v12  ;;  %v284_v13 = vpop.f32.mrf.mxu0  ;;  %v308_v14 = vpop.f32.mrf.mxu1 }
  0xbd   :  { %v370_v15 = vadd.f32 %v649_v36, %v284_v13  ;;  %v378_v16 = vadd.f32 %v649_v36, %v308_v14 }
  0xbf   :  { %402 = vst [vmem:[#allocation7 + $0x28] sm:$0xff] %v370_v15 }
  0xc0   :  { %410 = vst [vmem:[#allocation7 + $0x68] sm:$0xff] %v378_v16  ;;  %v332_v17 = vpop.f32.mrf.mxu2  ;;  %v356_v18 = vpop.f32.mrf.mxu3 }
  0xc1   :  { %v386_v19 = vadd.f32 %v649_v36, %v332_v17  ;;  %v394_v20 = vadd.f32 %v649_v36, %v356_v18 }
  0xc3   :  { %418 = vst [vmem:[#allocation7 + $0xa8] sm:$0xff] %v386_v19 }
  0xc4   :  { %426 = vst [vmem:[#allocation7 + $0xe8] sm:$0xff] %v394_v20  ;;  %v287_v21 = vpop.f32.mrf.mxu0  ;;  %v311_v22 = vpop.f32.mrf.mxu1 }
  0xc5   :  { %v371_v23 = vadd.f32 %v649_v36, %v287_v21  ;;  %v379_v24 = vadd.f32 %v649_v36, %v311_v22 }
  0xc7   :  { %403 = vst [vmem:[#allocation7 + $0x30] sm:$0xff] %v371_v23 }
  0xc8   :  { %411 = vst [vmem:[#allocation7 + $0x70] sm:$0xff] %v379_v24  ;;  %v335_v25 = vpop.f32.mrf.mxu2  ;;  %v359_v26 = vpop.f32.mrf.mxu3 }
  0xc9   :  { %v387_v27 = vadd.f32 %v649_v36, %v335_v25  ;;  %v395_v28 = vadd.f32 %v649_v36, %v359_v26 }
  0xcb   :  { %419 = vst [vmem:[#allocation7 + $0xb0] sm:$0xff] %v387_v27 }
  0xcc   :  { %427 = vst [vmem:[#allocation7 + $0xf0] sm:$0xff] %v395_v28  ;;  %v290_v29 = vpop.f32.mrf.mxu0  ;;  %v314_v30 = vpop.f32.mrf.mxu1 }
  0xcd   :  { %v372_v31 = vadd.f32 %v649_v36, %v290_v29  ;;  %v380_v32 = vadd.f32 %v649_v36, %v314_v30 }
  0xcf   :  { %404 = vst [vmem:[#allocation7 + $0x38] sm:$0xff] %v372_v31 }
  0xd0   :  { %412 = vst [vmem:[#allocation7 + $0x78] sm:$0xff] %v380_v32  ;;  %v338_v33 = vpop.f32.mrf.mxu2  ;;  %v362_v34 = vpop.f32.mrf.mxu3 }
  0xd1   :  { %v388_v35 = vadd.f32 %v649_v36, %v338_v33  ;;  %v396_v37 = vadd.f32 %v649_v36, %v362_v34 }
  0xd3   :  { %420 = vst [vmem:[#allocation7 + $0xb8] sm:$0xff] %v388_v35 }
  0xd4   :  { %428 = vst [vmem:[#allocation7 + $0xf8] sm:$0xff] %v396_v37 }
  0xd5   :  { %432 = vsyncadd [#allocation4], 3840  ;;  %s435_s25 = sshll.u32 %s692_s3, 4  ;;  %s581_s26 = smov [#allocation7]   ;;  %s436_s25 = int_to_ptr.hbm [resolvable:$true] %s435_s25 }
  0xd6   :  { %s433_s27 = sshll.u32 %s581_s26, 4  ;;  %s434_s27 = int_to_ptr.vmem [resolvable:$true] %s433_s27 }
  0xd7   :  { %441 = dma.vmem_to_hbm [thread:$0]  %s434_s27, 256, %s436_s25, [#allocation4], %s578_s20, %s578_s20, %s579_s21  }
  0xd8   :  { %575 = dma.done.wait [#allocation4], 4096  }
  0xd9   :  { %576 = vsyncadd [#allocation4], 4294963200 }
  0xda   :  { %446 = vsyncpa [#allocation3], 1 }
  0xdb   :  { %447 = vsyncpa [#allocation6], 1 }
  0xdc   :  { %448 = vsyncpa [#allocation4], 1 }

</bundles_post_ra>
